<compile_context>
chip_gen: v7x
topology: tpu7x:2x2x1
jax: 0.10.0
libtpu: 0.0.40
codegen_flags: <defaults>
</compile_context>

<pallas_src>
import numpy as np
import jax
import jax.numpy as jnp
from jax import lax
from jax.experimental import pallas as pl
from jax.experimental.pallas import tpu as pltpu

# sigmoid(1.0): the __edge_mask__ (all ones) is passed through .sigmoid() and
# multiplies every message in MessagePassing.propagate.
EDGE_MASK_SIG = float(1.0 / (1.0 + np.exp(-1.0)))


# ----------------------------------------------------------------------------
# Kernel 1: corner->center pairwise distance (hot path of _query_locals /
# _create_adjacent_mat, query_mode='corner').
#   dist[t, j] = min_k sqrt( ||corner[t,k] - center[j]||^2 + 1e-8 )
# computed as min_k ( ||corner[t,k]||^2 - 2 corner[t,k].center[j] ) + ||center[j]||^2,
# sqrt applied once after the min.
# ----------------------------------------------------------------------------
def _corner_dist_kernel(corners_ref, centers_ref, out_ref):
    # corners_ref: (8N, 3) -- corner-major: row k*N + t is corner k of box t
    # centers_ref: (3, N)
    # out_ref:     (N, N)  -- dist[target t, candidate j]
    N = out_ref.shape[0]

    centers = centers_ref[...]                                   # (3, N)
    neg2c = -2.0 * centers                                       # (3, N)
    cnorm = jnp.sum(centers * centers, axis=0, keepdims=True)    # (1, N)

    corners = corners_ref[...]                                   # (8N, 3)
    # one MXU matmul for all 8 corners' cross terms
    cross_all = jnp.dot(corners, neg2c,
                        preferred_element_type=jnp.float32)      # (8N, N)
    corner_norms = jnp.sum(corners * corners, axis=1,
                           keepdims=True)                        # (8N, 1)
    d2_all = cross_all + corner_norms                            # (8N, N)

    # min over the 8 corners in squared space (static, sublane-aligned slices)
    d2min = d2_all[0:N, :]
    for k in range(1, 8):
        d2min = jnp.minimum(d2min, d2_all[k * N:(k + 1) * N, :])

    # add center norm once, clamp tiny negative cancellation, single sqrt
    out_ref[...] = jnp.sqrt(jnp.maximum(d2min + cnorm, 0.0) + 1e-8)


def pairwise_corner_dist(corners_cm, centers_t):
    # corners_cm: (B, 8N, 3) corner-major, centers_t: (B, 3, N)
    B, M, _ = corners_cm.shape
    N = centers_t.shape[2]
    return pl.pallas_call(
        _corner_dist_kernel,
        out_shape=jax.ShapeDtypeStruct((B, N, N), jnp.float32),
        grid_spec=pltpu.PrefetchScalarGridSpec(
            num_scalar_prefetch=0,
            grid=(B,),
            in_specs=[
                pl.BlockSpec((None, M, 3), lambda b: (b, 0, 0)),
                pl.BlockSpec((None, 3, N), lambda b: (b, 0, 0)),
            ],
            out_specs=pl.BlockSpec((None, N, N), lambda b: (b, 0, 0)),
        ),
        compiler_params=pltpu.CompilerParams(dimension_semantics=("parallel",)),
    )(corners_cm, centers_t)


# ----------------------------------------------------------------------------
# Kernel 2: one sparse EdgeConv layer (MessagePassing, aggr='add',
# flow=source_to_target).  For every edge t -> j (j = topk_idx[t, k]):
#   h      = relu( x_j @ W1a + (x_t - x_j) @ W1b + b1 ) = relu( base[j] + Q[t] )
#   out[j] = sigmoid(1) * ( (sum of h over incoming edges) @ W2 + indeg[j]*b2 )
# Gather of base[j] and scatter-add into receivers are single one-hot MXU
# matmuls over the E = K*N edges (edge order e = k*N + t).
# ----------------------------------------------------------------------------
def _edgeconv_kernel(x_ref, idxc_ref, idxr_ref, indeg_ref,
                     w1a_ref, w1b_ref, b1_ref, w2_ref, b2_ref, out_ref):
    N = x_ref.shape[0]
    E = idxc_ref.shape[0]                  # E = K * N edges
    K = E // N

    x = x_ref[...]                                                     # (N, F)
    P = jnp.dot(x, w1a_ref[...], preferred_element_type=jnp.float32)   # (N, H)
    Q = jnp.dot(x, w1b_ref[...], preferred_element_type=jnp.float32)   # (N, H)
    base = P - Q + b1_ref[...]             # per-receiver term, b1 folded once

    idx_col = idxc_ref[...]                # (E, 1) int32: receiver j of edge e
    idx_row = idxr_ref[...]                # (1, E) int32: same, row layout

    lane_iota = lax.broadcasted_iota(jnp.int32, (E, N), 1)   # [e, j'] = j'
    sub_iota = lax.broadcasted_iota(jnp.int32, (N, E), 0)    # [j', e] = j'
    GM = (lane_iota == idx_col).astype(jnp.float32)          # (E, N) gather one-hot
    SC = (sub_iota == idx_row).astype(jnp.float32)           # (N, E) scatter one-hot

    GB = jnp.dot(GM, base, preferred_element_type=jnp.float32)   # (E, H) base[j(e)]
    Qrep = jnp.concatenate([Q] * K, axis=0)                      # (E, H) Q[t(e)], e = k*N + t
    H_all = jnp.maximum(GB + Qrep, 0.0)                          # (E, H) edge hidden
    S = jnp.dot(SC, H_all, preferred_element_type=jnp.float32)   # (N, H) scatter-add

    out = EDGE_MASK_SIG * (
        jnp.dot(S, w2_ref[...], preferred_element_type=jnp.float32)
        + indeg_ref[...] * b2_ref[...]
    )
    out_ref[...] = out.astype(out_ref.dtype)


def edge_conv_sparse(x, idx_col, idx_row, indeg, w1, b1, w2, b2):
    # x: (B, N, F), idx_col: (B, E, 1) int32, idx_row: (B, 1, E) int32,
    # indeg: (B, N, 1) f32, w1: (2F, H), b1: (H,), w2: (H, O), b2: (O,)
    B, N, F = x.shape
    E = idx_col.shape[1]
    H = w1.shape[1]
    O = w2.shape[1]
    w1a = w1[:F]
    w1b = w1[F:]
    return pl.pallas_call(
        _edgeconv_kernel,
        out_shape=jax.ShapeDtypeStruct((B, N, O), jnp.float32),
        grid_spec=pltpu.PrefetchScalarGridSpec(
            num_scalar_prefetch=0,
            grid=(B,),
            in_specs=[
                pl.BlockSpec((None, N, F), lambda b: (b, 0, 0)),
                pl.BlockSpec((None, E, 1), lambda b: (b, 0, 0)),
                pl.BlockSpec((None, 1, E), lambda b: (b, 0, 0)),
                pl.BlockSpec((None, N, 1), lambda b: (b, 0, 0)),
                pl.BlockSpec((F, H), lambda b: (0, 0)),
                pl.BlockSpec((F, H), lambda b: (0, 0)),
                pl.BlockSpec((1, H), lambda b: (0, 0)),
                pl.BlockSpec((H, O), lambda b: (0, 0)),
                pl.BlockSpec((1, O), lambda b: (0, 0)),
            ],
            out_specs=pl.BlockSpec((None, N, O), lambda b: (b, 0, 0)),
        ),
        compiler_params=pltpu.CompilerParams(dimension_semantics=("parallel",)),
    )(x, idx_col, idx_row, indeg, w1a, w1b, b1.reshape(1, H), w2, b2.reshape(1, O))


# ----------------------------------------------------------------------------
# Glue (plain JAX): adjacency / top-k construction, layer stacking.
# ----------------------------------------------------------------------------
def create_adjacent_mat(bbox_corner, object_masks, num_locals):
    # bbox_corner: (B, N, 8, 3), object_masks: (B, N)
    B, N, _, _ = bbox_corner.shape
    coord_min = jnp.min(bbox_corner, axis=2)
    coord_max = jnp.max(bbox_corner, axis=2)
    centers = (coord_min + coord_max) / 2.0                     # (B, N, 3)

    # corner-major layout: row k*N + t is corner k of box t
    corners_cm = jnp.transpose(bbox_corner, (0, 2, 1, 3)).reshape(B, 8 * N, 3)
    centers_t = jnp.transpose(centers, (0, 2, 1))               # (B, 3, N)

    dist = pairwise_corner_dist(corners_cm, centers_t)          # (B, N_tgt, N_cand)

    # mask invalid objects.  NOTE: if object_masks contains zeros, top_k still
    # returns num_locals indices (latent difference vs. the reference when a
    # target has fewer valid neighbours); with the all-ones mask used here it
    # is exact.
    dist = jnp.where(object_masks[:, None, :] == 0, 1e30, dist)
    # TODO(synk): overlaid-box IoU mask (box3d_iou_batch_tensor) omitted — the
    # reference implementation of that op is not part of this module.
    # exclude self (include_self=False in _create_adjacent_mat)
    dist = jnp.where(jnp.eye(N, dtype=bool)[None], 1e30, dist)

    _, topk_idx = jax.lax.top_k(-dist, num_locals)              # (B, N, K)
    topk_idx = topk_idx.astype(jnp.int32)

    # dense adjacency (for the returned 'adjacent_mat' / valid_mask / in-degree)
    # via a broadcast compare instead of a scatter.
    adj = (topk_idx[..., None] ==
           jnp.arange(N, dtype=jnp.int32)[None, None, None, :]).any(axis=2)
    adj = adj.astype(jnp.float32)                               # (B, N_t, N_j)
    return adj, topk_idx


def graph_module_forward(data_dict, params, num_locals):
    object_feats = data_dict["object_feats"]        # (B, N, F)
    object_masks = data_dict["object_mask"]         # (B, N) -- assumed all ones here
    select_feat_idx = data_dict["select_feat_idx"]  # (B,)
    bbox_corner = data_dict["bbox_corner"]          # (B, N, 8, 3)

    B, N, F = object_feats.shape

    adjacent_mat, topk_idx = create_adjacent_mat(bbox_corner, object_masks, num_locals)

    # flattened edge indices (edge order e = k*N + t), in both layouts the
    # kernel needs (column for the gather one-hot, row for the scatter one-hot)
    K = num_locals
    topk_idx_t = jnp.transpose(topk_idx, (0, 2, 1))             # (B, K, N)
    idx_col = topk_idx_t.reshape(B, K * N, 1)
    idx_row = topk_idx_t.reshape(B, 1, K * N)

    # receiver in-degree: adjacency-only, constant across the layer stack
    indeg = jnp.sum(adjacent_mat, axis=1)[..., None]            # (B, N, 1)

    # stacked EdgeConv layers (sparse top-k message passing, per-batch graph)
    feat = object_feats
    for (w1, b1, w2, b2) in params["gc_layers"]:
        feat = edge_conv_sparse(feat, idx_col, idx_row, indeg, w1, b1, w2, b2)

    new_obj_feats = object_feats + feat             # batch_obj_feats + node_feat
    b_idx = jnp.arange(B)
    enhanced_feats = new_obj_feats[b_idx, select_feat_idx]      # (B, F)
    valid_mask = adjacent_mat[b_idx, select_feat_idx] != 0      # (B, N) bool

    out = dict(data_dict)
    out["bbox_feature"] = new_obj_feats
    out["adjacent_mat"] = adjacent_mat
    out["enhanced_feats"] = enhanced_feats
    out["valid_mask"] = valid_mask
    # return_orientation=False -> these stay zero, as in the reference
    num_bins = 6
    out["edge_index"] = jnp.zeros((B, 2, N * num_locals), jnp.float32)
    out["edge_feature"] = jnp.zeros((B, N, num_locals, F), jnp.float32)
    out["num_edge_source"] = jnp.zeros((B,), jnp.int32)
    out["num_edge_target"] = jnp.zeros((B,), jnp.int32)
    out["edge_orientations"] = jnp.zeros((B, N * num_locals, num_bins), jnp.float32)
    out["edge_distances"] = jnp.zeros((B, N * num_locals), jnp.float32)
    return out


# ----------------------------------------------------------------------------
# Pure-JAX references (used only for the in-script correctness check)
# ----------------------------------------------------------------------------
def corner_dist_reference(bbox_corner, centers):
    # bbox_corner: (B, N, 8, 3), centers: (B, N, 3)
    diff = bbox_corner[:, :, :, None, :] - centers[:, None, None, :, :]
    d = jnp.sqrt(jnp.sum(diff * diff, axis=-1) + 1e-8)          # (B, N_t, 8, N_j)
    return jnp.min(d, axis=2)


def edge_conv_reference(x, adj, w1, b1, w2, b2):
    # dense reference: adj[b, t, j] = 1 means edge source t -> receiver j
    B, N, Fdim = x.shape
    x_src = jnp.broadcast_to(x[:, :, None, :], (B, N, N, Fdim))    # x[b, t]
    x_rcv = jnp.broadcast_to(x[:, None, :, :], (B, N, N, Fdim))    # x[b, j]
    edge = jnp.concatenate([x_rcv, x_src - x_rcv], axis=-1)        # (B, t, j, 2F)
    h = jnp.maximum(edge @ w1 + b1, 0.0)
    msg = (h @ w2 + b2) * EDGE_MASK_SIG
    return jnp.sum(adj[..., None] * msg, axis=1)                   # sum over sources t


# ----------------------------------------------------------------------------
# Deterministic parameter init (matches nn.Linear shapes of EdgeConv.map_edge)
# ----------------------------------------------------------------------------
def init_linear(key, fan_in, fan_out):
    kw, kb = jax.random.split(key)
    bound = 1.0 / np.sqrt(fan_in)
    w = jax.random.uniform(kw, (fan_in, fan_out), jnp.float32, -bound, bound)
    b = jax.random.uniform(kb, (fan_out,), jnp.float32, -bound, bound)
    return w, b


def init_params(key, in_size, out_size, num_layers):
    layers = []
    for _ in range(num_layers):
        k1, k2, key = jax.random.split(key, 3)
        w1, b1 = init_linear(k1, 2 * in_size, out_size)  # Linear(2*in, out)
        w2, b2 = init_linear(k2, out_size, out_size)     # Linear(out, out)
        layers.append((w1, b1, w2, b2))
        in_size = out_size
    return {"gc_layers": layers}


if __name__ == "__main__":
    # small config: in_size = out_size = feat_size = 32, num_proposals = 16
    B, N, F = 2, 16, 32
    NUM_LOCALS = 4
    NUM_LAYERS = 2

    key = jax.random.PRNGKey(0)
    k_feat, k_corner, k_param, k_sel = jax.random.split(key, 4)

    object_feats = jax.random.normal(k_feat, (B, N, F), jnp.float32)
    bbox_center = jax.random.normal(k_corner, (B, N, 1, 3), jnp.float32) * 5.0
    corner_offsets = (
        jnp.array(
            [[sx, sy, sz] for sx in (-1, 1) for sy in (-1, 1) for sz in (-1, 1)],
            jnp.float32,
        )
        * 0.5
    )
    bbox_corner = bbox_center + corner_offsets[None, None]       # (B, N, 8, 3)
    object_mask = jnp.ones((B, N), jnp.float32)
    select_feat_idx = jnp.array([3, 7], jnp.int32)

    data_dict = {
        "object_feats": object_feats,
        "object_mask": object_mask,
        "bbox_corner": bbox_corner,
        "select_feat_idx": select_feat_idx,
    }
    params = init_params(k_param, F, F, NUM_LAYERS)

    out = graph_module_forward(data_dict, params, NUM_LOCALS)
    jax.block_until_ready(out["bbox_feature"])
    jax.block_until_ready(out["enhanced_feats"])
    jax.block_until_ready(out["adjacent_mat"])

    assert out["bbox_feature"].shape == (B, N, F)
    assert out["enhanced_feats"].shape == (B, F)
    assert out["adjacent_mat"].shape == (B, N, N)
    assert out["valid_mask"].shape == (B, N)
    # every target has exactly NUM_LOCALS neighbours
    assert int(np.asarray(out["adjacent_mat"]).sum()) == B * N * NUM_LOCALS

    # --- correctness checks against pure-JAX references (loose tolerances) ---
    centers = (jnp.min(bbox_corner, axis=2) + jnp.max(bbox_corner, axis=2)) / 2.0
    corners_cm = jnp.transpose(bbox_corner, (0, 2, 1, 3)).reshape(B, 8 * N, 3)
    dist_pallas = pairwise_corner_dist(corners_cm, jnp.transpose(centers, (0, 2, 1)))
    dist_ref = corner_dist_reference(bbox_corner, centers)
    np.testing.assert_allclose(np.asarray(dist_pallas), np.asarray(dist_ref),
                               rtol=5e-2, atol=5e-2)

    adj, topk_idx = create_adjacent_mat(bbox_corner, object_mask, NUM_LOCALS)
    topk_idx_t = jnp.transpose(topk_idx, (0, 2, 1))
    idx_col = topk_idx_t.reshape(B, NUM_LOCALS * N, 1)
    idx_row = topk_idx_t.reshape(B, 1, NUM_LOCALS * N)
    indeg = jnp.sum(adj, axis=1)[..., None]
    w1, b1, w2, b2 = params["gc_layers"][0]
    ec_pallas = edge_conv_sparse(object_feats, idx_col, idx_row, indeg, w1, b1, w2, b2)
    ec_ref = edge_conv_reference(object_feats, adj, w1, b1, w2, b2)
    np.testing.assert_allclose(np.asarray(ec_pallas), np.asarray(ec_ref),
                               rtol=5e-2, atol=5e-2)

    print("KERNEL_OK")
</pallas_src>

<mosaic_0001>
module attributes {stable_mosaic.version = 11 : i64} {
  func.func @_corner_dist_kernel(%arg0: i32, %arg1: memref<1x128x3xf32, #tpu.memory_space<vmem>>, %arg2: memref<1x3x16xf32, #tpu.memory_space<vmem>>, %arg3: memref<1x16x16xf32, #tpu.memory_space<vmem>>) attributes {dimension_semantics = [#tpu.dimension_semantics<parallel>], iteration_bounds = array<i64: 2>, scalar_prefetch = 0 : i64, scratch_operands = 0 : i64, tpu.core_type = #tpu.core_type<tc>, window_params = [{transform_indices = @transform_0, window_bounds = array<i64: 1, 128, 3>}, {transform_indices = @transform_1, window_bounds = array<i64: 1, 3, 16>}, {transform_indices = @transform_2, window_bounds = array<i64: 1, 16, 16>}]} {
    %c0 = arith.constant 0 : index
    %c0_0 = arith.constant 0 : index
    %c0_1 = arith.constant 0 : index
    %0 = vector.load %arg2[%c0, %c0_0, %c0_1] : memref<1x3x16xf32, #tpu.memory_space<vmem>>, vector<1x3x16xf32>
    %1 = vector.shape_cast %0 : vector<1x3x16xf32> to vector<3x16xf32>
    %cst = arith.constant -2.000000e+00 : f32
    %2 = vector.broadcast %cst : f32 to vector<3x16xf32>
    %3 = arith.mulf %2, %1 : vector<3x16xf32>
    %4 = arith.mulf %1, %1 : vector<3x16xf32>
    %cst_2 = arith.constant dense<0.000000e+00> : vector<16xf32>
    %5 = vector.multi_reduction <add>, %4, %cst_2 [0] : vector<3x16xf32> to vector<16xf32>
    %6 = vector.shape_cast %5 : vector<16xf32> to vector<1x16xf32>
    %c0_3 = arith.constant 0 : index
    %c0_4 = arith.constant 0 : index
    %c0_5 = arith.constant 0 : index
    %7 = vector.load %arg1[%c0_3, %c0_4, %c0_5] : memref<1x128x3xf32, #tpu.memory_space<vmem>>, vector<1x128x3xf32>
    %8 = vector.shape_cast %7 : vector<1x128x3xf32> to vector<128x3xf32>
    %cst_6 = arith.constant dense<0.000000e+00> : vector<128x16xf32>
    %9 = tpu.matmul %8, %3, %cst_6 {dimension_numbers = #tpu.dot_dimension_numbers<[1], [0], [0], [1], [0, 0, 1, 1], [], []>} : vector<128x3xf32>, vector<3x16xf32>, vector<128x16xf32> -> vector<128x16xf32>
    %10 = arith.mulf %8, %8 : vector<128x3xf32>
    %cst_7 = arith.constant dense<0.000000e+00> : vector<128xf32>
    %11 = vector.multi_reduction <add>, %10, %cst_7 [1] : vector<128x3xf32> to vector<128xf32>
    %12 = vector.shape_cast %11 : vector<128xf32> to vector<128x1xf32>
    %13 = vector.broadcast %12 : vector<128x1xf32> to vector<128x16xf32>
    %14 = arith.addf %9, %13 : vector<128x16xf32>
    %15 = vector.extract_strided_slice %14 {offsets = [0, 0], sizes = [16, 16], strides = [1, 1]} : vector<128x16xf32> to vector<16x16xf32>
    %16 = vector.extract_strided_slice %14 {offsets = [16, 0], sizes = [16, 16], strides = [1, 1]} : vector<128x16xf32> to vector<16x16xf32>
    %17 = arith.minimumf %15, %16 : vector<16x16xf32>
    %18 = vector.extract_strided_slice %14 {offsets = [32, 0], sizes = [16, 16], strides = [1, 1]} : vector<128x16xf32> to vector<16x16xf32>
    %19 = arith.minimumf %17, %18 : vector<16x16xf32>
    %20 = vector.extract_strided_slice %14 {offsets = [48, 0], sizes = [16, 16], strides = [1, 1]} : vector<128x16xf32> to vector<16x16xf32>
    %21 = arith.minimumf %19, %20 : vector<16x16xf32>
    %22 = vector.extract_strided_slice %14 {offsets = [64, 0], sizes = [16, 16], strides = [1, 1]} : vector<128x16xf32> to vector<16x16xf32>
    %23 = arith.minimumf %21, %22 : vector<16x16xf32>
    %24 = vector.extract_strided_slice %14 {offsets = [80, 0], sizes = [16, 16], strides = [1, 1]} : vector<128x16xf32> to vector<16x16xf32>
    %25 = arith.minimumf %23, %24 : vector<16x16xf32>
    %26 = vector.extract_strided_slice %14 {offsets = [96, 0], sizes = [16, 16], strides = [1, 1]} : vector<128x16xf32> to vector<16x16xf32>
    %27 = arith.minimumf %25, %26 : vector<16x16xf32>
    %28 = vector.extract_strided_slice %14 {offsets = [112, 0], sizes = [16, 16], strides = [1, 1]} : vector<128x16xf32> to vector<16x16xf32>
    %29 = arith.minimumf %27, %28 : vector<16x16xf32>
    %30 = vector.broadcast %6 : vector<1x16xf32> to vector<16x16xf32>
    %31 = arith.addf %29, %30 : vector<16x16xf32>
    %cst_8 = arith.constant 0.000000e+00 : f32
    %32 = vector.broadcast %cst_8 : f32 to vector<16x16xf32>
    %33 = arith.maximumf %31, %32 : vector<16x16xf32>
    %cst_9 = arith.constant 9.99999993E-9 : f32
    %34 = vector.broadcast %cst_9 : f32 to vector<16x16xf32>
    %35 = arith.addf %33, %34 : vector<16x16xf32>
    %36 = math.sqrt %35 : vector<16x16xf32>
    %c0_10 = arith.constant 0 : index
    %c0_11 = arith.constant 0 : index
    %c0_12 = arith.constant 0 : index
    %37 = vector.load %arg3[%c0_10, %c0_11, %c0_12] : memref<1x16x16xf32, #tpu.memory_space<vmem>>, vector<1x16x16xf32>
    %38 = vector.shape_cast %37 : vector<1x16x16xf32> to vector<16x16xf32>
    %39 = vector.shape_cast %36 : vector<16x16xf32> to vector<1x16x16xf32>
    tpu.vector_store %arg3[%c0_10, %c0_11, %c0_12], %39 {strides = array<i32>} : memref<1x16x16xf32, #tpu.memory_space<vmem>>, vector<1x16x16xf32>,
    return
  }
  func.func @transform_0(%arg0: i32) -> (i32, i32, i32) {
    %c0_i32 = arith.constant 0 : i32
    %c0_i32_0 = arith.constant 0 : i32
    %c0_i32_1 = arith.constant 0 : i32
    return %arg0, %c0_i32, %c0_i32_0 : i32, i32, i32
  }
  func.func @transform_1(%arg0: i32) -> (i32, i32, i32) {
    %c0_i32 = arith.constant 0 : i32
    %c0_i32_0 = arith.constant 0 : i32
    %c0_i32_1 = arith.constant 0 : i32
    return %arg0, %c0_i32, %c0_i32_0 : i32, i32, i32
  }
  func.func @transform_2(%arg0: i32) -> (i32, i32, i32) {
    %c0_i32 = arith.constant 0 : i32
    %c0_i32_0 = arith.constant 0 : i32
    %c0_i32_1 = arith.constant 0 : i32
    return %arg0, %c0_i32, %c0_i32_0 : i32, i32, i32
  }
}

</mosaic_0001>

<bundles_post_ra>
// kernel: tpu_custom_call.1
= control target key start
LH: loop header
LB: loop body
LE: loop exit
PB: predicated region body
PF: predicated region fallthrough
CT: control target
= control target key end

     0   :  { %7 = vsyncpa [#allocation3], 0  ;;  %s942_s0 = inlined_call_operand.vmem [shape: f32[2,128,3], index: 0, kind: input, shape index: {}]   ;;  %s943_s1 = inlined_call_operand.vmem [shape: f32[2,3,16], index: 1, kind: input, shape index: {}]   ;;  %s944_s2 = inlined_call_operand.hbm [shape: f32[2,16,16], index: 2, kind: output, shape index: {}]  }
   0x1   :  { %9 = vsyncpa [#allocation3 + $0x1], 0  ;;  %s777_s9 = smov 0   ;;  %s779_s10 = smov 0  }
   0x2   :  { %s781_s11 = smov 0   ;;  %s783_s12 = smov 0  }
   0x3 LB: > { %s798_s13 = sadd.s32 4294967295, %s757_s12   ;;  %s573_s14 = sadd.s32 4294967294, %s757_s12   ;;  %s757_s12 = sphi %s783_s12, %s950_s12   ;;  %s753_s11 = sphi %s781_s11, %s949_s11   ;;  %s749_s10 = sphi %s779_s10, %s948_s10   ;;  %s745_s9 = sphi %s777_s9, %s947_s9  }
   0x4   : > { %s802_s15 = sadd.s32 1, %s757_s12   ;;  %s74_s16 = sadd.s32 1, %s753_s11 }
   0x5   : > { %s71_s17 = ssub.s32 %s757_s12, %s802_s15  ;;  %p84_p0 = scmp.ne.s32.totalorder %s753_s11, %s749_s10 }
   0x6   : > { %p72_p1 = scmp.eq.s32.totalorder %s71_s17, 0  ;;  %p85_p2 = scmp.eq.s32.totalorder %s798_s13, 1 }
   0x7   : > { %p90_p3 = scmp.ne.s32.totalorder %s749_s10, %s745_s9  ;;  %p91_p4 = scmp.eq.s32.totalorder %s573_s14, 1 }
   0x8   : > { %s813_s18 = scalar_select %p72_p1, %s753_s11, %s74_s16  }
   0x9   : > { %p815_p5 = por %p85_p2, %p84_p0  ;;  %p819_p6 = por %p91_p4, %p90_p3 }
   0xa   : > { %p576_p7 = scmp.ge.s32.totalorder %s757_s12, 1  ;;  %p124_p8 = scmp.lt.s32.totalorder %s757_s12, 3 }
   0xc   : > { %p125_p9 = pnand %p576_p7, %p124_p8 }
   0xd   : > { %p150_p10 = scmp.lt.s32.totalorder (!%p125_p9), %s798_s13, 1  ;;  %vm202_vm0 = vcmask (!%p125_p9), 23552   ;;  %vm299_vm1 = vcmask (!%p125_p9), 1042432   ;;  %vm162_vm2 = vcmask (!%p125_p9), 124928   ;;  %s147_s30 = sand.u32 (!%p125_p9), 1, %s749_s10   ;;  %vm482_vm4 = vcmask (!%p125_p9), 130048  }
   0xe   : > { %128 = sbr.rel (%p125_p9) target bundleno = 303 (0x12f), region = 28  ;;  %s577_s3 = sshll.u32 (!%p125_p9), %s147_s30, 4 }
   0xf   : > { %s604_s4 = sshll.u32 (!%p125_p9), %s798_s13, 8  ;;  %s149_s5 = scalar_lea.vmem (!%p125_p9), [#allocation2], %s577_s3 }
  0x10   : > { %s499_s6 = sshll.u32 (!%p125_p9), %s149_s5, 4  ;;  %s897_s14 = scalar_lea.hbm (!%p125_p9), %s944_s2, %s604_s4  ;;  %s899_s6 = int_to_ptr.vmem [resolvable:$true] %s499_s6 }
  0x11   : > { %s695_s16 = scalar_lea.vmem (!%p125_p9), %s899_s6, 256  ;;  %s759_s17 = smov (!%p125_p9), [#allocation2]  }
  0x12   : > { %p696_p11 = scmp.ne.s32.totalorder (!%p125_p9), %s899_s6, %s695_s16 }
  0x14   : > { %p697_p12 = pnand (!%p125_p9), %p696_p11, %p815_p5 }
  0x15   : > { %s151_s21 = scalar_select %p150_p10, %s798_s13, 1 }
  0x16   : > { %s901_s13 = scalar_lea.sflag [#allocation3], %s147_s30  ;;  %p698_p13 = pneg %p697_p12 }
  0x17   : > { %s603_s22 = sshll.u32 %s151_s21, 7  ;;  %s580_s23 = sshll.u32 %s151_s21, 2 }
  0x18   : > { %s830_s26 = scalar_lea.vmem %s942_s0, %s603_s22  ;;  %s158_s29 = scalar_lea.vmem %s943_s1, %s580_s23 }
  0x19   : > { %v835_v0 = vld [vmem:[%s158_s29] sm:$0x7]  ;;  %v172_v4 = vld [vmem:[%s830_s26 + $0x10] sm:$0xff]  ;;  %v171_v6 = vld [vmem:[%s830_s26 + $0x8] sm:$0xff]  ;;  %s699_s21 = sshll.u32 %s759_s17, 4  ;;  %s700_s21 = int_to_ptr.vmem [resolvable:$false] %s699_s21 }
  0x1a   : > { %v170_v1 = vld [vmem:[%s830_s26] sm:$0xff]  ;;  %v160_v2 = vmul.f32 -2.0, %v835_v0  ;;  %v179_v7 = vld [vmem:[%s830_s26 + $0x48] sm:$0xff]  ;;  %v188_v8 = vmul.f32 %v172_v4, %v172_v4  ;;  %v173_v9 = vld [vmem:[%s830_s26 + $0x18] sm:$0xff]  ;;  %v187_v14 = vmul.f32 %v171_v6, %v171_v6  ;;  %v161_v58 = vmul.f32 %v835_v0, %v835_v0  ;;  %s701_s22 = scalar_lea.vmem %s700_s21, 512  ;;  %p702_p0 = scmp.lt.s32.totalorder %s899_s6, %s700_s21 }
  0x1b   : > { %v186_v3 = vmul.f32 %v170_v1, %v170_v1  ;;  %624 = vmatprep.mubr.msk.f32.mxu0 %vm202_vm0, %v170_v1  ;;  %v178_v5 = vld [vmem:[%s830_s26 + $0x40] sm:$0xff]  ;;  %v180_v10 = vld [vmem:[%s830_s26 + $0x50] sm:$0xff]  ;;  %v189_v13 = vmul.f32 %v173_v9, %v173_v9  ;;  %v181_v15 = vld [vmem:[%s830_s26 + $0x58] sm:$0xff]  ;;  %v195_v35 = vmul.f32 %v179_v7, %v179_v7  ;;  %p703_p1 = scmp.lt.s32.totalorder %s701_s22, %s695_s16 }
  0x1c   : > { %636 = vmatprep.mubr.msk.f32.mxu1 %vm202_vm0, %v178_v5  ;;  %622 = vmatprep.subr.msk.mxu0 %vm299_vm1, %v160_v2  ;;  %v209_v11 = vsel %vm202_vm0, %v188_v8, 0.0  ;;  %v174_v16 = vld [vmem:[%s830_s26 + $0x20] sm:$0xff]  ;;  %v175_v17 = vld [vmem:[%s830_s26 + $0x28] sm:$0xff]  ;;  %v206_v20 = vsel %vm202_vm0, %v187_v14, 0.0  ;;  %v176_v24 = vld [vmem:[%s830_s26 + $0x30] sm:$0xff]  ;;  %v194_v32 = vmul.f32 %v178_v5, %v178_v5  ;;  %v197_v38 = vmul.f32 %v181_v15, %v181_v15 }
  0x1d   : > { %648 = vmatprep.subr.msk.mxu1 %vm299_vm1, %v160_v2  ;;  %623 = vmatpush3.msk.msra.mxu0 %vm299_vm1, %v160_v2  ;;  %v203_v12 = vsel %vm202_vm0, %v186_v3, 0.0  ;;  %v182_v18 = vld [vmem:[%s830_s26 + $0x60] sm:$0xff]  ;;  %v212_v19 = vsel %vm202_vm0, %v189_v13, 0.0  ;;  %v191_v21 = vmul.f32 %v175_v17, %v175_v17  ;;  %v190_v22 = vmul.f32 %v174_v16, %v174_v16  ;;  %v183_v23 = vld [vmem:[%s830_s26 + $0x68] sm:$0xff]  ;;  %v177_v25 = vld [vmem:[%s830_s26 + $0x38] sm:$0xff]  ;;  %p704_p2 = por %p703_p1, %p702_p0 }
  0x1e   : > { %649 = vmatpush3.msk.msra.mxu1 %vm299_vm1, %v160_v2  ;;  %625 = vmatmul.mubr.msk.f32.vlgmr.msra.gmra.mrb[0].mxu0 %vm202_vm0, %v171_v6  ;;  %v184_v26 = vld [vmem:[%s830_s26 + $0x70] sm:$0xff]  ;;  %v193_v29 = vmul.f32 %v177_v25, %v177_v25  ;;  %v192_v30 = vmul.f32 %v176_v24, %v176_v24  ;;  %v185_v31 = vld [vmem:[%s830_s26 + $0x78] sm:$0xff]  ;;  %v230_v36 = vsel %vm202_vm0, %v195_v35, 0.0  ;;  %v227_v37 = vsel %vm202_vm0, %v194_v32, 0.0 }
  0x1f   : > { %637 = vmatmul.mubr.msk.f32.vlgmr.msra.gmra.mrb[0].mxu1 %vm202_vm0, %v179_v7  ;;  %627 = vmatprep.mubr.msk.f32.mxu0 %vm202_vm0, %v172_v4  ;;  %v218_v27 = vsel %vm202_vm0, %v191_v21, 0.0  ;;  %v215_v28 = vsel %vm202_vm0, %v190_v22, 0.0  ;;  %v196_v39 = vmul.f32 %v180_v10, %v180_v10  ;;  %v236_v40 = vsel %vm202_vm0, %v197_v38, 0.0  ;;  %p705_p3 = pnand %p704_p2, %p698_p13 }
  0x20   : > { %639 = vmatprep.mubr.msk.f32.mxu1 %vm202_vm0, %v180_v10  ;;  %210 = vadd.xlane.f32.xlu1 %v209_v11  ;;  %v224_v33 = vsel %vm202_vm0, %v193_v29, 0.0  ;;  %v221_v34 = vsel %vm202_vm0, %v192_v30, 0.0  ;;  %v199_v42 = vmul.f32 %v183_v23, %v183_v23  ;;  %v198_v43 = vmul.f32 %v182_v18, %v182_v18 }
  0x21   : > { %204 = vadd.xlane.f32.xlu0 %v203_v12  ;;  %v233_v41 = vsel %vm202_vm0, %v196_v39, 0.0  ;;  %v201_v46 = vmul.f32 %v185_v31, %v185_v31  ;;  %v200_v47 = vmul.f32 %v184_v26, %v184_v26  ;;  %v163_v61 = vsel %vm162_vm2, %v161_v58, 0.0 }
  0x22   : > { %628 = vmatmul.mubr.msk.f32.gmra.mrb[2].mxu0 %vm202_vm0, %v173_v9  ;;  %v242_v44 = vsel %vm202_vm0, %v199_v42, 0.0  ;;  %v239_v45 = vsel %vm202_vm0, %v198_v43, 0.0  ;;  %v164_v3 = vrot.slane %v163_v61, 4 }
  0x23   : > { %640 = vmatmul.mubr.msk.f32.gmra.mrb[2].mxu1 %vm202_vm0, %v181_v15  ;;  %630 = vmatprep.mubr.msk.f32.mxu0 %vm202_vm0, %v174_v16  ;;  %v248_v48 = vsel %vm202_vm0, %v201_v46, 0.0  ;;  %v245_v49 = vsel %vm202_vm0, %v200_v47, 0.0 }
  0x24   : > { %642 = vmatprep.mubr.msk.f32.mxu1 %vm202_vm0, %v182_v18  ;;  %213 = vadd.xlane.f32.xlu1 %v212_v19  ;;  %v165_v12 = vadd.f32 %v164_v3, %v163_v61 }
  0x25   : > { %207 = vadd.xlane.f32.xlu0 %v206_v20 }
  0x26   : > { %631 = vmatmul.mubr.msk.f32.gmra.mrb[4].mxu0 %vm202_vm0, %v175_v17  ;;  %v166_v21 = vrot.slane %v165_v12, 2 }
  0x27   : > { %643 = vmatmul.mubr.msk.f32.gmra.mrb[4].mxu1 %vm202_vm0, %v183_v23  ;;  %633 = vmatprep.mubr.msk.f32.mxu0 %vm202_vm0, %v176_v24 }
  0x28   : > { %645 = vmatprep.mubr.msk.f32.mxu1 %vm202_vm0, %v184_v26  ;;  %219 = vadd.xlane.f32.xlu1 %v218_v27  ;;  %v167_v32 = vadd.f32 %v166_v21, %v165_v12 }
  0x29   : > { %216 = vadd.xlane.f32.xlu0 %v215_v28 }
  0x2a   : > { %634 = vmatmul.mubr.msk.f32.gmra.mrb[6].mxu0 %vm202_vm0, %v177_v25 }
  0x2b   : > { %646 = vmatmul.mubr.msk.f32.gmra.mrb[6].mxu1 %vm202_vm0, %v185_v31 }
  0x2c   : > { %225 = vadd.xlane.f32.xlu1 %v224_v33 }
  0x2d   : > { %222 = vadd.xlane.f32.xlu0 %v221_v34 }
  0x30   : > { %231 = vadd.xlane.f32.xlu1 %v230_v36 }
  0x31   : > { %228 = vadd.xlane.f32.xlu0 %v227_v37 }
  0x34   : > { %237 = vadd.xlane.f32.xlu1 %v236_v40 }
  0x35   : > { %234 = vadd.xlane.f32.xlu0 %v233_v41  ;;  %v168_v41 = vrot.slane %v167_v32, 1 }
  0x38   : > { %243 = vadd.xlane.f32.xlu1 %v242_v44 }
  0x39   : > { %240 = vadd.xlane.f32.xlu0 %v239_v45 }
  0x3c   : > { %249 = vadd.xlane.f32.xlu1 %v248_v48 }
  0x3d   : > { %246 = vadd.xlane.f32.xlu0 %v245_v49 }
  0xad   : > { %v211_v50 = vpop.xlane.xlu1 %210 }
  0xae   : > { %v205_v51 = vpop.xlane.xlu0 %204 }
  0xb1   : > { %v214_v52 = vpop.xlane.xlu1 %213 }
  0xb2   : > { %v208_v53 = vpop.xlane.xlu0 %207 }
  0xb5   : > { %v220_v54 = vpop.xlane.xlu1 %219 }
  0xb6   : > { %v217_v55 = vpop.xlane.xlu0 %216 }
  0xb9   : > { %v226_v56 = vpop.xlane.xlu1 %225 }
  0xba   : > { %v223_v57 = vpop.xlane.xlu0 %222 }
  0xbd   : > { %v232_v59 = vpop.xlane.xlu1 %231 }
  0xbe   : > { %v229_v60 = vpop.xlane.xlu0 %228 }
  0xc1   : > { %v238_v4 = vpop.xlane.xlu1 %237 }
  0xc2   : > { %v235_v5 = vpop.xlane.xlu0 %234 }
  0xc5   : > { %v244_v23 = vpop.xlane.xlu1 %243 }
  0xc6   : > { %v241_v25 = vpop.xlane.xlu0 %240 }
  0xc9   : > { %v250_v38 = vpop.xlane.xlu1 %249 }
  0xca   : > { %v247_v42 = vpop.xlane.xlu0 %246 }
  0xf1   : > { %v626_v62 = vpop.f32.mrb[0].mxu0 }
  0xf2   : > { %v638_v63 = vpop.f32.mrb[0].mxu1  ;;  %v369_v1 = vpop.f32.mrb[1].mxu0  ;;  %v375_v8 = vadd.f32 %v626_v62, %v208_v53 }
  0xf3   : > { %v409_v2 = vpop.f32.mrb[1].mxu1  ;;  %v370_v13 = vadd.f32 %v369_v1, %v205_v51  ;;  %v415_v34 = vadd.f32 %v638_v63, %v232_v59 }
  0xf4   : > { %v410_v36 = vadd.f32 %v409_v2, %v229_v60 }
  0xf5   : > { %v629_v6 = vpop.f32.mrb[2].mxu0 }
  0xf6   : > { %v641_v7 = vpop.f32.mrb[2].mxu1  ;;  %v385_v9 = vadd.f32 %v629_v6, %v214_v52  ;;  %v379_v10 = vpop.f32.mrb[3].mxu0  ;;  %v169_v52 = vadd.f32 %v168_v41, %v167_v32 }
  0xf7   : > { %v419_v11 = vpop.f32.mrb[3].mxu1  ;;  %v380_v0 = vadd.f32 %v379_v10, %v211_v50  ;;  %v425_v39 = vadd.f32 %v641_v7, %v238_v4 }
  0xf8   : > { %v449_v14 = vmin.f32 %v375_v8, %v385_v9  ;;  %v420_v43 = vadd.f32 %v419_v11, %v235_v5 }
  0xf9   : > { %v448_v15 = vmin.f32 %v370_v13, %v380_v0  ;;  %v632_v16 = vpop.f32.mrb[4].mxu0 }
  0xfa   : > { %v644_v17 = vpop.f32.mrb[4].mxu1  ;;  %v395_v18 = vadd.f32 %v632_v16, %v220_v54  ;;  %v389_v19 = vpop.f32.mrb[5].mxu0 }
  0xfb   : > { %v429_v20 = vpop.f32.mrb[5].mxu1  ;;  %v390_v22 = vadd.f32 %v389_v19, %v217_v55  ;;  %v435_v45 = vadd.f32 %v644_v17, %v244_v23 }
  0xfc   : > { %v451_v24 = vmin.f32 %v449_v14, %v395_v18  ;;  %v430_v49 = vadd.f32 %v429_v20, %v241_v25 }
  0xfd   : > { %v450_v26 = vmin.f32 %v448_v15, %v390_v22  ;;  %v635_v27 = vpop.f32.mrb[6].mxu0 }
  0xfe   : > { %v647_v28 = vpop.f32.mrb[6].mxu1  ;;  %v405_v29 = vadd.f32 %v635_v27, %v226_v56  ;;  %v399_v30 = vpop.f32.mrb[7].mxu0 }
  0xff   : > { %v439_v31 = vpop.f32.mrb[7].mxu1  ;;  %v400_v33 = vadd.f32 %v399_v30, %v223_v57  ;;  %v445_v47 = vadd.f32 %v647_v28, %v250_v38 }
 0x100   : > { %v453_v35 = vmin.f32 %v451_v24, %v405_v29  ;;  %v440_v50 = vadd.f32 %v439_v31, %v247_v42 }
 0x101   : > { %v452_v37 = vmin.f32 %v450_v26, %v400_v33 }
 0x102   : > { %v455_v40 = vmin.f32 %v453_v35, %v415_v34 }
 0x103   : > { %v454_v44 = vmin.f32 %v452_v37, %v410_v36 }
 0x104   : > { %v457_v46 = vmin.f32 %v455_v40, %v425_v39 }
 0x105   : > { %v456_v48 = vmin.f32 %v454_v44, %v420_v43 }
 0x106   : > { %v459_v51 = vmin.f32 %v457_v46, %v435_v45 }
 0x107   : > { %v458_v53 = vmin.f32 %v456_v48, %v430_v49 }
 0x108   : > { %v461_v54 = vmin.f32 %v459_v51, %v445_v47 }
 0x109   : > { %v460_v55 = vmin.f32 %v458_v53, %v440_v50 }
 0x10a   : > { %v463_v56 = vadd.f32 %v461_v54, %v169_v52 }
 0x10b   : > { %v462_v57 = vadd.f32 %v460_v55, %v169_v52 }
 0x10c   : > { %v465_v58 = vmax.f32 %v463_v56, 0.0 }
 0x10d   : > { %v464_v59 = vmax.f32 %v462_v57, 0.0 }
 0x10e   : > { %v467_v60 = vadd.f32 1e-08, %v465_v58 }
 0x10f   : > { %v466_v61 = vadd.f32 1e-08, %v464_v59 }
 0x110   : > { %691 = vrsqrt.f32 %v467_v60  ;;  %vm477_vm3 = vcmp.eq.f32.partialorder %v467_v60, inf  ;;  %v480_v3 = vand.u32 2147483648, %v467_v60  ;;  %vm479_vm6 = vcmp.eq.f32.partialorder %v467_v60, 0.0 }
 0x111   : > { %693 = vrsqrt.f32 %v466_v61  ;;  %vm470_vm5 = vcmp.eq.f32.partialorder %v466_v61, inf  ;;  %v473_v4 = vand.u32 2147483648, %v466_v61  ;;  %vm472_vm7 = vcmp.eq.f32.partialorder %v466_v61, 0.0 }
 0x11a   : > { %v692_v62 = vpop.eup %691 }
 0x11b   : > { %v694_v63 = vpop.eup %693  ;;  %v476_v1 = vmul.f32 %v692_v62, %v467_v60 }
 0x11c   : > { %v469_v2 = vmul.f32 %v694_v63, %v466_v61 }
 0x11d   : > { %v478_v5 = vsel %vm477_vm3, %v467_v60, %v476_v1 }
 0x11e   : > { %v471_v6 = vsel %vm470_vm5, %v466_v61, %v469_v2  ;;  %v481_v7 = vsel %vm479_vm6, %v480_v3, %v478_v5 }
 0x11f   : > { %v474_v8 = vsel %vm472_vm7, %v473_v4, %v471_v6  ;;  %484 = vst.msk [vmem:[%s149_s5 + $0x8] sm:$0xff] %vm482_vm4, %v481_v7 }
 0x120   : > { %483 = vst.msk [vmem:[%s149_s5] sm:$0xff] %vm482_vm4, %v474_v8 }
 0x121   : > { %708 = shalt.err (!%p705_p3)
}
 0x122   : > { %s709_s23 = scalar_lea.hbm %s897_s14, 256  ;;  %s713_s26 = scalar_lea.hbm %s944_s2, 512 }
 0x123   : > { %p710_p4 = scmp.ne.s32.totalorder %s897_s14, %s709_s23  ;;  %p714_p9 = scmp.lt.u32.totalorder %s897_s14, %s944_s2 }
 0x124   : > { %p715_p10 = scmp.lt.u32.totalorder %s713_s26, %s709_s23  ;;  %p717_p12 = scmp.lt.u32.totalorder %s709_s23, %s897_s14 }
 0x125   : > { %p711_p7 = pnand %p710_p4, %p815_p5 }
 0x126   : > { %p716_p11 = por %p715_p10, %p714_p9 }
 0x127   : > { %p712_p8 = pneg %p711_p7 }
 0x128   : > { %p718_p13 = por %p717_p12, %p716_p11 }
 0x12a   : > { %p719_p0 = pnand %p718_p13, %p712_p8 }
 0x12c   : > { %722 = shalt.err (!%p719_p0)
}
 0x12d   : > { %s760_s29 = smov 128   ;;  %s761_s30 = smov 8  }
 0x12e   : > { %650 = dma.vmem_to_hbm [thread:$0]  (%p815_p5), %s899_s6, 256, %s897_s14, %s901_s13, %s760_s29, %s760_s29, %s761_s30  }
 0x12f PF: > { %p656_p1 = scmp.ge.s32.totalorder %s757_s12, 2  ;;  %s514_s3 = sand.u32 1, %s745_s9  }
 0x130   : > { %s515_s4 = scalar_lea.sflag [#allocation3], %s514_s3 }
 0x131   : > { %p653_p2 = pnand %p656_p1, %p819_p6 }
 0x133   : > { %740 = dma.done.wait (!%p653_p2), %s515_s4, 256  }
 0x134   : > { %742 = vsyncadd (!%p653_p2), %s515_s4, 4294967040  ;;  %p12_p3 = scmp.ge.s32.totalorder %s802_s15, 4   ;;  %s947_s9 = smov %s749_s10 }
 0x135   : > { %s948_s10 = smov %s753_s11  ;;  %s949_s11 = smov %s813_s18 }
 0x136   : > { %s950_s12 = smov %s802_s15  ;;  %14 = sbr.rel (!%p12_p3) target bundleno = 3 (0x3), region = 66 }
 0x13d   :  { %520 = vsyncpa [#allocation3], 1 }
 0x13e   :  { %522 = vsyncpa [#allocation3 + $0x1], 1 }

</bundles_post_ra>
